<compile_context>
chip_gen: v7x
topology: tpu7x:2x2x1
jax: 0.10.0
libtpu: 0.0.40
codegen_flags: <defaults>
</compile_context>

<pallas_src>
import functools

import jax
import jax.numpy as jnp
from jax.experimental import pallas as pl
from jax.experimental.pallas import tpu as pltpu

LOG_SIG_MAX = 2.0
LOG_SIG_MIN = -20.0

_LANE = 128
_SUBLANE = 8


def _round_up(x, m):
    return ((x + m - 1) // m) * m


def _policy_kernel(x_ref, w1_ref, b1_ref, w2_ref, b2_ref, wh_ref, bh_ref,
                   out_ref, *, num_actions):
    """One batch tile: 3 MXU matmuls (heads fused) + relu/bias/clamp in VMEM."""
    x = x_ref[...]

    h1 = jnp.dot(x, w1_ref[...], preferred_element_type=jnp.float32) + b1_ref[...]
    h1 = jnp.maximum(h1, 0.0).astype(w2_ref.dtype)          # F.relu

    h2 = jnp.dot(h1, w2_ref[...], preferred_element_type=jnp.float32) + b2_ref[...]
    h2 = jnp.maximum(h2, 0.0).astype(wh_ref.dtype)          # F.relu

    # fused mean/log_std head: lanes [0, A) = mean, [A, 2A) = log_std, rest pad
    head = jnp.dot(h2, wh_ref[...], preferred_element_type=jnp.float32) + bh_ref[...]

    # torch.clamp only on the log_std lanes; mean lanes pass through untouched.
    col = jax.lax.broadcasted_iota(jnp.int32, head.shape, 1)
    is_log_std = (col >= num_actions) & (col < 2 * num_actions)
    out_ref[...] = jnp.where(is_log_std,
                             jnp.clip(head, LOG_SIG_MIN, LOG_SIG_MAX),
                             head)


def gaussian_policy_forward(state, params, *, block_b=256,
                            compute_dtype=jnp.float32,
                            vmem_limit_bytes=None):
    """Returns (mean, log_std), matching GaussianPolicy.forward semantics."""
    B, num_inputs = state.shape
    H = params["w1"].shape[1]
    A = params["wm"].shape[1]

    in_p = _round_up(num_inputs, _LANE)      # contraction axis of layer 1
    h_p = _round_up(H, _LANE)                # hidden width
    a2_p = _round_up(2 * A, _LANE)           # lane-dense fused head output
    tb = _round_up(min(block_b, _round_up(B, _SUBLANE)), _SUBLANE)
    b_p = _round_up(B, tb)                   # padded batch (tb | b_p)

    def pad2(a, rows, cols, dtype):
        a = a.astype(dtype)
        return jnp.pad(a, ((0, rows - a.shape[0]), (0, cols - a.shape[1])))

    x_p = pad2(state, b_p, in_p, compute_dtype)
    w1 = pad2(params["w1"], in_p, h_p, compute_dtype)
    w2 = pad2(params["w2"], h_p, h_p, compute_dtype)
    wh = pad2(jnp.concatenate([params["wm"], params["ws"]], axis=1),
              h_p, a2_p, compute_dtype)
    b1 = pad2(params["b1"], 1, h_p, jnp.float32)
    b2 = pad2(params["b2"], 1, h_p, jnp.float32)
    bh = pad2(jnp.concatenate([params["bm"], params["bs"]], axis=1),
              1, a2_p, jnp.float32)

    resident = lambda shape: pl.BlockSpec(shape, lambda i: (0,) * len(shape))

    flops = 2 * b_p * (in_p * h_p + h_p * h_p + h_p * a2_p)
    bytes_accessed = (x_p.nbytes + w1.nbytes + w2.nbytes + wh.nbytes
                      + b1.nbytes + b2.nbytes + bh.nbytes + b_p * a2_p * 4)

    out = pl.pallas_call(
        functools.partial(_policy_kernel, num_actions=A),
        out_shape=jax.ShapeDtypeStruct((b_p, a2_p), jnp.float32),
        grid=(b_p // tb,),
        in_specs=[
            pl.BlockSpec((tb, in_p), lambda i: (i, 0)),   # x: streamed per tile
            resident((in_p, h_p)),                         # w1 (VMEM-resident)
            resident((1, h_p)),                            # b1
            resident((h_p, h_p)),                          # w2
            resident((1, h_p)),                            # b2
            resident((h_p, a2_p)),                         # fused head weight
            resident((1, a2_p)),                           # fused head bias
        ],
        out_specs=pl.BlockSpec((tb, a2_p), lambda i: (i, 0)),
        compiler_params=pltpu.CompilerParams(
            dimension_semantics=("parallel",),
            vmem_limit_bytes=vmem_limit_bytes,
        ),
        cost_estimate=pl.CostEstimate(flops=flops, transcendentals=0,
                                      bytes_accessed=bytes_accessed),
    )(x_p, w1, b1, w2, b2, wh, bh)

    mean = out[:B, :A]
    log_std = out[:B, A:2 * A]
    return mean, log_std


def _xavier_uniform(key, fan_in, fan_out):
    # matches torch.nn.init.xavier_uniform_(gain=1); stored as (in, out)
    limit = jnp.sqrt(6.0 / (fan_in + fan_out))
    return jax.random.uniform(key, (fan_in, fan_out), jnp.float32, -limit, limit)


def init_params(key, num_inputs, num_actions, hidden_dim):
    k1, k2, k3, k4 = jax.random.split(key, 4)
    return {
        "w1": _xavier_uniform(k1, num_inputs, hidden_dim),
        "b1": jnp.zeros((1, hidden_dim), jnp.float32),
        "w2": _xavier_uniform(k2, hidden_dim, hidden_dim),
        "b2": jnp.zeros((1, hidden_dim), jnp.float32),
        "wm": _xavier_uniform(k3, hidden_dim, num_actions),
        "bm": jnp.zeros((1, num_actions), jnp.float32),
        "ws": _xavier_uniform(k4, hidden_dim, num_actions),
        "bs": jnp.zeros((1, num_actions), jnp.float32),
    }


# TODO(synk): GaussianPolicy.sample (Normal.rsample / tanh squash / log_prob)
# is not part of forward(); it is left to plain JAX on top of (mean, log_std).

if __name__ == "__main__":
    batch, num_inputs, num_actions, hidden_dim = 2, 16, 4, 32

    key = jax.random.PRNGKey(0)
    k_state, k_params, k_state2 = jax.random.split(key, 3)

    state = jax.random.normal(k_state, (batch, num_inputs), jnp.float32)
    params = init_params(k_params, num_inputs, num_actions, hidden_dim)

    def reference(s, p):
        h1 = jnp.maximum(s @ p["w1"] + p["b1"], 0.0)
        h2 = jnp.maximum(h1 @ p["w2"] + p["b2"], 0.0)
        mean_r = h2 @ p["wm"] + p["bm"]
        log_std_r = jnp.clip(h2 @ p["ws"] + p["bs"], LOG_SIG_MIN, LOG_SIG_MAX)
        return mean_r, log_std_r

    # small single-tile case
    mean, log_std = gaussian_policy_forward(state, params)
    jax.block_until_ready((mean, log_std))
    mean_ref, log_std_ref = reference(state, params)
    assert mean.shape == (batch, num_actions)
    assert log_std.shape == (batch, num_actions)
    assert jnp.allclose(mean, mean_ref, atol=1e-4)
    assert jnp.allclose(log_std, log_std_ref, atol=1e-4)

    # multi-tile / ragged-batch case: grid = 3 tiles of 128 rows over B=300
    state2 = jax.random.normal(k_state2, (300, num_inputs), jnp.float32)
    mean2, log_std2 = gaussian_policy_forward(state2, params, block_b=128)
    jax.block_until_ready((mean2, log_std2))
    mean2_ref, log_std2_ref = reference(state2, params)
    assert mean2.shape == (300, num_actions)
    assert jnp.allclose(mean2, mean2_ref, atol=1e-4)
    assert jnp.allclose(log_std2, log_std2_ref, atol=1e-4)

    print("KERNEL_OK")
</pallas_src>

<mosaic_0001>
module attributes {stable_mosaic.version = 11 : i64} {
  func.func @_policy_kernel(%arg0: i32, %arg1: memref<8x128xf32, #tpu.memory_space<vmem>>, %arg2: memref<128x128xf32, #tpu.memory_space<vmem>>, %arg3: memref<1x128xf32, #tpu.memory_space<vmem>>, %arg4: memref<128x128xf32, #tpu.memory_space<vmem>>, %arg5: memref<1x128xf32, #tpu.memory_space<vmem>>, %arg6: memref<128x128xf32, #tpu.memory_space<vmem>>, %arg7: memref<1x128xf32, #tpu.memory_space<vmem>>, %arg8: memref<8x128xf32, #tpu.memory_space<vmem>>) attributes {dimension_semantics = [#tpu.dimension_semantics<parallel>], iteration_bounds = array<i64: 1>, scalar_prefetch = 0 : i64, scratch_operands = 0 : i64, tpu.core_type = #tpu.core_type<tc>, window_params = [{transform_indices = @transform_0, window_bounds = array<i64: 8, 128>}, {pipeline_mode = #tpu.pipeline_mode<synchronous>, transform_indices = @transform_1, window_bounds = array<i64: 128, 128>}, {pipeline_mode = #tpu.pipeline_mode<synchronous>, transform_indices = @transform_2, window_bounds = array<i64: 1, 128>}, {pipeline_mode = #tpu.pipeline_mode<synchronous>, transform_indices = @transform_3, window_bounds = array<i64: 128, 128>}, {pipeline_mode = #tpu.pipeline_mode<synchronous>, transform_indices = @transform_4, window_bounds = array<i64: 1, 128>}, {pipeline_mode = #tpu.pipeline_mode<synchronous>, transform_indices = @transform_5, window_bounds = array<i64: 128, 128>}, {pipeline_mode = #tpu.pipeline_mode<synchronous>, transform_indices = @transform_6, window_bounds = array<i64: 1, 128>}, {transform_indices = @transform_7, window_bounds = array<i64: 8, 128>}]} {
    %c0 = arith.constant 0 : index
    %c0_0 = arith.constant 0 : index
    %0 = vector.load %arg1[%c0, %c0_0] : memref<8x128xf32, #tpu.memory_space<vmem>>, vector<8x128xf32>
    %c0_1 = arith.constant 0 : index
    %c0_2 = arith.constant 0 : index
    %1 = vector.load %arg2[%c0_1, %c0_2] : memref<128x128xf32, #tpu.memory_space<vmem>>, vector<128x128xf32>
    %cst = arith.constant dense<0.000000e+00> : vector<8x128xf32>
    %2 = tpu.matmul %0, %1, %cst {dimension_numbers = #tpu.dot_dimension_numbers<[1], [0], [0], [1], [0, 0, 1, 1], [], []>} : vector<8x128xf32>, vector<128x128xf32>, vector<8x128xf32> -> vector<8x128xf32>
    %c0_3 = arith.constant 0 : index
    %c0_4 = arith.constant 0 : index
    %3 = vector.load %arg3[%c0_3, %c0_4] : memref<1x128xf32, #tpu.memory_space<vmem>>, vector<1x128xf32>
    %4 = vector.broadcast %3 : vector<1x128xf32> to vector<8x128xf32>
    %5 = arith.addf %2, %4 : vector<8x128xf32>
    %cst_5 = arith.constant 0.000000e+00 : f32
    %6 = vector.broadcast %cst_5 : f32 to vector<8x128xf32>
    %7 = arith.maximumf %5, %6 : vector<8x128xf32>
    %c0_6 = arith.constant 0 : index
    %c0_7 = arith.constant 0 : index
    %8 = vector.load %arg4[%c0_6, %c0_7] : memref<128x128xf32, #tpu.memory_space<vmem>>, vector<128x128xf32>
    %cst_8 = arith.constant dense<0.000000e+00> : vector<8x128xf32>
    %9 = tpu.matmul %7, %8, %cst_8 {dimension_numbers = #tpu.dot_dimension_numbers<[1], [0], [0], [1], [0, 0, 1, 1], [], []>} : vector<8x128xf32>, vector<128x128xf32>, vector<8x128xf32> -> vector<8x128xf32>
    %c0_9 = arith.constant 0 : index
    %c0_10 = arith.constant 0 : index
    %10 = vector.load %arg5[%c0_9, %c0_10] : memref<1x128xf32, #tpu.memory_space<vmem>>, vector<1x128xf32>
    %11 = vector.broadcast %10 : vector<1x128xf32> to vector<8x128xf32>
    %12 = arith.addf %9, %11 : vector<8x128xf32>
    %cst_11 = arith.constant 0.000000e+00 : f32
    %13 = vector.broadcast %cst_11 : f32 to vector<8x128xf32>
    %14 = arith.maximumf %12, %13 : vector<8x128xf32>
    %c0_12 = arith.constant 0 : index
    %c0_13 = arith.constant 0 : index
    %15 = vector.load %arg6[%c0_12, %c0_13] : memref<128x128xf32, #tpu.memory_space<vmem>>, vector<128x128xf32>
    %cst_14 = arith.constant dense<0.000000e+00> : vector<8x128xf32>
    %16 = tpu.matmul %14, %15, %cst_14 {dimension_numbers = #tpu.dot_dimension_numbers<[1], [0], [0], [1], [0, 0, 1, 1], [], []>} : vector<8x128xf32>, vector<128x128xf32>, vector<8x128xf32> -> vector<8x128xf32>
    %c0_15 = arith.constant 0 : index
    %c0_16 = arith.constant 0 : index
    %17 = vector.load %arg7[%c0_15, %c0_16] : memref<1x128xf32, #tpu.memory_space<vmem>>, vector<1x128xf32>
    %18 = vector.broadcast %17 : vector<1x128xf32> to vector<8x128xf32>
    %19 = arith.addf %16, %18 : vector<8x128xf32>
    %20 = tpu.iota {dimensions = array<i32: 1>} : vector<8x128xi32>
    %c4_i32 = arith.constant 4 : i32
    %21 = vector.broadcast %c4_i32 : i32 to vector<8x128xi32>
    %22 = arith.cmpi sge, %20, %21 : vector<8x128xi32>
    %c8_i32 = arith.constant 8 : i32
    %23 = vector.broadcast %c8_i32 : i32 to vector<8x128xi32>
    %24 = arith.cmpi slt, %20, %23 : vector<8x128xi32>
    %25 = arith.andi %22, %24 : vector<8x128xi1>
    %cst_17 = arith.constant -2.000000e+01 : f32
    %cst_18 = arith.constant 2.000000e+00 : f32
    %26 = vector.broadcast %cst_17 : f32 to vector<8x128xf32>
    %27 = arith.maximumf %26, %19 : vector<8x128xf32>
    %28 = vector.broadcast %cst_18 : f32 to vector<8x128xf32>
    %29 = arith.minimumf %28, %27 : vector<8x128xf32>
    %30 = arith.select %25, %29, %19 : vector<8x128xi1>, vector<8x128xf32>
    %c0_19 = arith.constant 0 : index
    %c0_20 = arith.constant 0 : index
    %31 = vector.load %arg8[%c0_19, %c0_20] : memref<8x128xf32, #tpu.memory_space<vmem>>, vector<8x128xf32>
    tpu.vector_store %arg8[%c0_19, %c0_20], %30 {strides = array<i32>} : memref<8x128xf32, #tpu.memory_space<vmem>>, vector<8x128xf32>,
    return
  }
  func.func @transform_0(%arg0: i32) -> (i32, i32) {
    %c0_i32 = arith.constant 0 : i32
    %c0_i32_0 = arith.constant 0 : i32
    return %arg0, %c0_i32 : i32, i32
  }
  func.func @transform_1(%arg0: i32) -> (i32, i32) {
    %c0_i32 = arith.constant 0 : i32
    %c0_i32_0 = arith.constant 0 : i32
    %c0_i32_1 = arith.constant 0 : i32
    return %c0_i32, %c0_i32_0 : i32, i32
  }
  func.func @transform_2(%arg0: i32) -> (i32, i32) {
    %c0_i32 = arith.constant 0 : i32
    %c0_i32_0 = arith.constant 0 : i32
    %c0_i32_1 = arith.constant 0 : i32
    return %c0_i32, %c0_i32_0 : i32, i32
  }
  func.func @transform_3(%arg0: i32) -> (i32, i32) {
    %c0_i32 = arith.constant 0 : i32
    %c0_i32_0 = arith.constant 0 : i32
    %c0_i32_1 = arith.constant 0 : i32
    return %c0_i32, %c0_i32_0 : i32, i32
  }
  func.func @transform_4(%arg0: i32) -> (i32, i32) {
    %c0_i32 = arith.constant 0 : i32
    %c0_i32_0 = arith.constant 0 : i32
    %c0_i32_1 = arith.constant 0 : i32
    return %c0_i32, %c0_i32_0 : i32, i32
  }
  func.func @transform_5(%arg0: i32) -> (i32, i32) {
    %c0_i32 = arith.constant 0 : i32
    %c0_i32_0 = arith.constant 0 : i32
    %c0_i32_1 = arith.constant 0 : i32
    return %c0_i32, %c0_i32_0 : i32, i32
  }
  func.func @transform_6(%arg0: i32) -> (i32, i32) {
    %c0_i32 = arith.constant 0 : i32
    %c0_i32_0 = arith.constant 0 : i32
    %c0_i32_1 = arith.constant 0 : i32
    return %c0_i32, %c0_i32_0 : i32, i32
  }
  func.func @transform_7(%arg0: i32) -> (i32, i32) {
    %c0_i32 = arith.constant 0 : i32
    %c0_i32_0 = arith.constant 0 : i32
    return %arg0, %c0_i32 : i32, i32
  }
}

</mosaic_0001>

<bundles_post_ra>
// kernel: tpu_custom_call.1
= control target key start
LH: loop header
LB: loop body
LE: loop exit
PB: predicated region body
PF: predicated region fallthrough
CT: control target
= control target key end

     0   :  { %12 = vsyncpa [#allocation3], 0  ;;  %s905_s0 = inlined_call_operand.hbm [shape: f32[8,128], index: 0, kind: input, shape index: {}]   ;;  %s906_s1 = inlined_call_operand.hbm [shape: f32[128,128], index: 1, kind: input, shape index: {}]   ;;  %s907_s2 = inlined_call_operand.vmem [shape: f32[1,128], index: 2, kind: input, shape index: {}]   ;;  %s908_s3 = inlined_call_operand.hbm [shape: f32[128,128], index: 3, kind: input, shape index: {}]   ;;  %s909_s4 = inlined_call_operand.vmem [shape: f32[1,128], index: 4, kind: input, shape index: {}]   ;;  %s910_s5 = inlined_call_operand.hbm [shape: f32[128,128], index: 5, kind: input, shape index: {}]   ;;  %s911_s6 = inlined_call_operand.vmem [shape: f32[1,128], index: 6, kind: input, shape index: {}]   ;;  %s912_s7 = inlined_call_operand.hbm [shape: f32[8,128], index: 7, kind: output, shape index: {}]  }
   0x1   :  { %13 = vsyncpa [#allocation6], 0 }
   0x2   :  { %14 = vsyncpa [#allocation9], 0 }
   0x3   :  { %15 = vsyncpa [#allocation4], 0  ;;  %s747_s24 = smov [#allocation5]   ;;  %s629_s28 = scalar_lea.hbm %s906_s1, 2048 }
   0x4   :  { %s31_s25 = sshll.u32 %s747_s24, 4  ;;  %p630_p0 = scmp.ne.s32.totalorder %s906_s1, %s629_s28  ;;  %s32_s25 = int_to_ptr.vmem [resolvable:$true] %s31_s25 }
   0x5   :  { %p633_p1 = scmp.lt.u32.totalorder %s629_s28, %s906_s1 }
   0x7   :  { %p635_p2 = pnand %p633_p1, %p630_p0 }
   0x9   :  { %638 = shalt.err (!%p635_p2)
}
   0xa   :  { %s639_s10 = scalar_lea.vmem %s32_s25, 2048  ;;  %p644_p4 = scmp.lt.s32.totalorder %s32_s25, %s32_s25 }
   0xb   :  { %p640_p3 = scmp.ne.s32.totalorder %s32_s25, %s639_s10  ;;  %p645_p5 = scmp.lt.s32.totalorder %s639_s10, %s639_s10 }
   0xd   :  { %p646_p6 = por %p645_p5, %p644_p4 }
   0xf   :  { %p647_p7 = pnand %p646_p6, %p640_p3 }
  0x11   :  { %650 = shalt.err (!%p647_p7)
}
  0x12   :  { %s748_s11 = smov 128   ;;  %s749_s12 = smov 8  }
  0x13   :  { %37 = dma.hbm_to_vmem [thread:$0]  %s906_s1, 2048, %s32_s25, [#allocation6], %s748_s11, %s748_s11, %s749_s12  }
  0x14   :  { %s750_s15 = smov [#allocation2]   ;;  %s751_s17 = smov [#allocation7]  }
  0x15   :  { %s22_s16 = sshll.u32 %s750_s15, 4  ;;  %s45_s18 = sshll.u32 %s751_s17, 4  ;;  %s23_s16 = int_to_ptr.vmem [resolvable:$true] %s22_s16  ;;  %s46_s18 = int_to_ptr.vmem [resolvable:$true] %s45_s18 }
  0x16   :  { %s651_s21 = scalar_lea.hbm %s905_s0, 128 }
  0x17   :  { %p652_p8 = scmp.ne.s32.totalorder %s905_s0, %s651_s21  ;;  %p655_p9 = scmp.lt.u32.totalorder %s651_s21, %s905_s0 }
  0x19   :  { %p657_p10 = pnand %p655_p9, %p652_p8 }
  0x1b   :  { %660 = shalt.err (!%p657_p10)
}
  0x1c   :  { %s661_s1 = scalar_lea.vmem %s23_s16, 128  ;;  %p666_p12 = scmp.lt.s32.totalorder %s23_s16, %s23_s16 }
  0x1d   :  { %p662_p11 = scmp.ne.s32.totalorder %s23_s16, %s661_s1  ;;  %p667_p13 = scmp.lt.s32.totalorder %s661_s1, %s661_s1 }
  0x1f   :  { %p668_p0 = por %p667_p13, %p666_p12 }
  0x21   :  { %p669_p1 = pnand %p668_p0, %p662_p11 }
  0x23   :  { %672 = shalt.err (!%p669_p1)
}
  0x24   :  { %25 = dma.hbm_to_vmem [thread:$0]  %s905_s0, 128, %s23_s16, [#allocation3]  }
  0x25   :  { %s673_s30 = scalar_lea.hbm %s908_s3, 2048 }
  0x26   :  { %p674_p2 = scmp.ne.s32.totalorder %s908_s3, %s673_s30  ;;  %p677_p3 = scmp.lt.u32.totalorder %s673_s30, %s908_s3 }
  0x28   :  { %p679_p4 = pnand %p677_p3, %p674_p2 }
  0x2a   :  { %682 = shalt.err (!%p679_p4)
}
  0x2b   :  { %s683_s14 = scalar_lea.vmem %s46_s18, 2048  ;;  %p688_p6 = scmp.lt.s32.totalorder %s46_s18, %s46_s18 }
  0x2c   :  { %p684_p5 = scmp.ne.s32.totalorder %s46_s18, %s683_s14  ;;  %p689_p7 = scmp.lt.s32.totalorder %s683_s14, %s683_s14 }
  0x2e   :  { %p690_p8 = por %p689_p7, %p688_p6 }
  0x30   :  { %p691_p9 = pnand %p690_p8, %p684_p5 }
  0x32   :  { %694 = shalt.err (!%p691_p9)
}
  0x33   :  { %51 = dma.hbm_to_vmem [thread:$0]  %s908_s3, 2048, %s46_s18, [#allocation6], %s748_s11, %s748_s11, %s749_s12  }
  0x34   :  { %s752_s16 = smov [#allocation8]   ;;  %s695_s21 = scalar_lea.hbm %s910_s5, 2048 }
  0x35   :  { %s59_s17 = sshll.u32 %s752_s16, 4  ;;  %p696_p10 = scmp.ne.s32.totalorder %s910_s5, %s695_s21  ;;  %s60_s17 = int_to_ptr.vmem [resolvable:$true] %s59_s17 }
  0x36   :  { %p699_p11 = scmp.lt.u32.totalorder %s695_s21, %s910_s5 }
  0x38   :  { %p701_p12 = pnand %p699_p11, %p696_p10 }
  0x3a   :  { %704 = shalt.err (!%p701_p12)
}
  0x3b   :  { %s705_s1 = scalar_lea.vmem %s60_s17, 2048  ;;  %p710_p0 = scmp.lt.s32.totalorder %s60_s17, %s60_s17 }
  0x3c   :  { %p706_p13 = scmp.ne.s32.totalorder %s60_s17, %s705_s1  ;;  %p711_p1 = scmp.lt.s32.totalorder %s705_s1, %s705_s1 }
  0x3e   :  { %p712_p2 = por %p711_p1, %p710_p0 }
  0x40   :  { %p713_p3 = pnand %p712_p2, %p706_p13 }
  0x42   :  { %716 = shalt.err (!%p713_p3)
}
  0x43   :  { %65 = dma.hbm_to_vmem [thread:$0]  %s910_s5, 2048, %s60_s17, [#allocation9], %s748_s11, %s748_s11, %s749_s12  }
  0x44   :  { %739 = dma.done.wait [#allocation3], 128  }
  0x45   :  { %740 = vsyncadd [#allocation3], 4294967168 }
  0x46   :  { %741 = dma.done.wait [#allocation6], 4096  }
  0x47   :  { %742 = vsyncadd [#allocation6], 4294963200 }
  0x48   :  { %743 = dma.done.wait [#allocation9], 2048  }
  0x49   :  { %744 = vsyncadd [#allocation9], 4294965248  ;;  %v753_v0 = vmov 0.0|0.0   ;;  %vm754_vm0 = vmmov 0   ;;  %v755_v1 = vmov 0.0   ;;  %v81_v2 = vld [vmem:[#allocation5] sm:$0xff] }
  0x4a   :  { %547 = vmatprep.subr.bf16.mxu0 %v753_v0  ;;  %474 = vmatprep.mubr.msk.f32.mxu0 %vm754_vm0, %v755_v1  ;;  %v82_v3 = vld [vmem:[#allocation5 + $0x8] sm:$0xff]  ;;  %v83_v4 = vld [vmem:[#allocation5 + $0x10] sm:$0xff]  ;;  %v84_v6 = vld [vmem:[#allocation5 + $0x18] sm:$0xff]  ;;  %s756_s28 = smov [#allocation10]  }
  0x4b   :  { %571 = vmatprep.subr.bf16.mxu1 %v753_v0  ;;  %509 = vmatprep.mubr.msk.f32.mxu1 %vm754_vm0, %v755_v1  ;;  %v548_v5 = vpack.c.bf16 %v82_v3, %v81_v2  ;;  %v551_v7 = vpack.c.bf16 %v84_v6, %v83_v4  ;;  %v85_v8 = vld [vmem:[#allocation5 + $0x20] sm:$0xff]  ;;  %v86_v9 = vld [vmem:[#allocation5 + $0x28] sm:$0xff]  ;;  %v177_v12 = vld [vmem:[#allocation7 + $0x10] sm:$0xff]  ;;  %s377_s29 = sshll.u32 %s756_s28, 4  ;;  %s378_s29 = int_to_ptr.vmem [resolvable:$true] %s377_s29 }
  0x4c   :  { %v175_v10 = vld [vmem:[#allocation7] sm:$0xff]  ;;  %v176_v11 = vld [vmem:[#allocation7 + $0x8] sm:$0xff]  ;;  %v178_v13 = vld [vmem:[#allocation7 + $0x18] sm:$0xff]  ;;  %v554_v14 = vpack.c.bf16 %v86_v9, %v85_v8  ;;  %p722_p5 = scmp.lt.s32.totalorder %s378_s29, %s378_s29 }
  0x4d   :  { %549 = vmatpush3.bf16.msra.mxu0 %v548_v5  ;;  %v572_v15 = vpack.c.bf16 %v176_v11, %v175_v10  ;;  %v87_v16 = vld [vmem:[#allocation5 + $0x30] sm:$0xff]  ;;  %v88_v17 = vld [vmem:[#allocation5 + $0x38] sm:$0xff]  ;;  %v575_v18 = vpack.c.bf16 %v178_v13, %v177_v12  ;;  %v179_v19 = vld [vmem:[#allocation7 + $0x20] sm:$0xff] }
  0x4e   :  { %550 = vmatprep.subr.bf16.mxu0 %v753_v0  ;;  %v180_v20 = vld [vmem:[#allocation7 + $0x28] sm:$0xff]  ;;  %v557_v21 = vpack.c.bf16 %v88_v17, %v87_v16  ;;  %v89_v22 = vld [vmem:[#allocation5 + $0x40] sm:$0xff]  ;;  %v181_v25 = vld [vmem:[#allocation7 + $0x30] sm:$0xff] }
  0x4f   :  { %573 = vmatpush3.bf16.msra.mxu1 %v572_v15  ;;  %v90_v23 = vld [vmem:[#allocation5 + $0x48] sm:$0xff]  ;;  %v578_v24 = vpack.c.bf16 %v180_v20, %v179_v19  ;;  %v182_v26 = vld [vmem:[#allocation7 + $0x38] sm:$0xff]  ;;  %v91_v28 = vld [vmem:[#allocation5 + $0x50] sm:$0xff] }
  0x50   :  { %574 = vmatprep.subr.bf16.mxu1 %v753_v0  ;;  %v560_v27 = vpack.c.bf16 %v90_v23, %v89_v22  ;;  %v92_v29 = vld [vmem:[#allocation5 + $0x58] sm:$0xff]  ;;  %v581_v30 = vpack.c.bf16 %v182_v26, %v181_v25  ;;  %v183_v31 = vld [vmem:[#allocation7 + $0x40] sm:$0xff]  ;;  %v184_v32 = vld [vmem:[#allocation7 + $0x48] sm:$0xff] }
  0x51   :  { %552 = vmatpush3.bf16.msra.mxu0 %v551_v7  ;;  %v563_v33 = vpack.c.bf16 %v92_v29, %v91_v28  ;;  %v93_v34 = vld [vmem:[#allocation5 + $0x60] sm:$0xff]  ;;  %v94_v35 = vld [vmem:[#allocation5 + $0x68] sm:$0xff]  ;;  %v584_v36 = vpack.c.bf16 %v184_v32, %v183_v31  ;;  %v185_v37 = vld [vmem:[#allocation7 + $0x50] sm:$0xff] }
  0x52   :  { %553 = vmatprep.subr.bf16.mxu0 %v753_v0  ;;  %v186_v38 = vld [vmem:[#allocation7 + $0x58] sm:$0xff]  ;;  %v566_v39 = vpack.c.bf16 %v94_v35, %v93_v34  ;;  %v95_v40 = vld [vmem:[#allocation5 + $0x70] sm:$0xff]  ;;  %v187_v43 = vld [vmem:[#allocation7 + $0x60] sm:$0xff] }
  0x53   :  { %576 = vmatpush3.bf16.msra.mxu1 %v575_v18  ;;  %v96_v41 = vld [vmem:[#allocation5 + $0x78] sm:$0xff]  ;;  %v587_v42 = vpack.c.bf16 %v186_v38, %v185_v37  ;;  %v188_v44 = vld [vmem:[#allocation7 + $0x68] sm:$0xff]  ;;  %v189_v48 = vld [vmem:[#allocation7 + $0x70] sm:$0xff] }
  0x54   :  { %577 = vmatprep.subr.bf16.mxu1 %v753_v0  ;;  %v569_v45 = vpack.c.bf16 %v96_v41, %v95_v40  ;;  %v590_v46 = vpack.c.bf16 %v188_v44, %v187_v43  ;;  %v80_v47 = vld [vmem:[#allocation2] sm:$0xff]  ;;  %v269_v51 = vld [vmem:[#allocation8] sm:$0xff]  ;;  %v270_v52 = vld [vmem:[#allocation8 + $0x8] sm:$0xff] }
  0x55   :  { %555 = vmatpush3.bf16.msra.mxu0 %v554_v14  ;;  %v190_v49 = vld [vmem:[#allocation7 + $0x78] sm:$0xff]  ;;  %v271_v53 = vld [vmem:[#allocation8 + $0x10] sm:$0xff]  ;;  %v596_v54 = vpack.c.bf16 %v270_v52, %v269_v51  ;;  %v273_v57 = vld [vmem:[#allocation8 + $0x20] sm:$0xff] }
  0x56   :  { %556 = vmatprep.subr.bf16.mxu0 %v753_v0  ;;  %v593_v50 = vpack.c.bf16 %v190_v49, %v189_v48  ;;  %v272_v55 = vld [vmem:[#allocation8 + $0x18] sm:$0xff]  ;;  %v274_v58 = vld [vmem:[#allocation8 + $0x28] sm:$0xff]  ;;  %v275_v60 = vld [vmem:[#allocation8 + $0x30] sm:$0xff] }
  0x57   :  { %579 = vmatpush3.bf16.msra.mxu1 %v578_v24  ;;  %v599_v56 = vpack.c.bf16 %v272_v55, %v271_v53  ;;  %v602_v59 = vpack.c.bf16 %v274_v58, %v273_v57  ;;  %v276_v61 = vld [vmem:[#allocation8 + $0x38] sm:$0xff]  ;;  %v277_v63 = vld [vmem:[#allocation8 + $0x40] sm:$0xff]  ;;  %v279_v3 = vld [vmem:[#allocation8 + $0x50] sm:$0xff] }
  0x58   :  { %580 = vmatprep.subr.bf16.mxu1 %v753_v0  ;;  %v605_v62 = vpack.c.bf16 %v276_v61, %v275_v60  ;;  %v280_v4 = vld [vmem:[#allocation8 + $0x58] sm:$0xff]  ;;  %v281_v6 = vld [vmem:[#allocation8 + $0x60] sm:$0xff]  ;;  %v282_v7 = vld [vmem:[#allocation8 + $0x68] sm:$0xff] }
  0x59   :  { %558 = vmatpush3.bf16.msra.mxu0 %v557_v21  ;;  %v611_v5 = vpack.c.bf16 %v280_v4, %v279_v3  ;;  %v614_v8 = vpack.c.bf16 %v282_v7, %v281_v6  ;;  %v388_v9 = vld [vmem:[%s907_s2] ss:$0 sm:$0xff]  ;;  %v283_v14 = vld [vmem:[#allocation8 + $0x70] sm:$0xff]  ;;  %v362_v21 = vlaneseq }
  0x5a   :  { %559 = vmatprep.subr.bf16.mxu0 %v753_v0  ;;  %v284_v15 = vld [vmem:[#allocation8 + $0x78] sm:$0xff] }
  0x5b   :  { %582 = vmatpush3.bf16.msra.mxu1 %v581_v30  ;;  %v617_v16 = vpack.c.bf16 %v284_v15, %v283_v14  ;;  %v389_v17 = vld [vmem:[%s909_s4] ss:$0 sm:$0xff]  ;;  %v363_v22 = vand.u32 127, %v362_v21  ;;  %s717_s4 = scalar_lea.vmem %s378_s29, 128 }
  0x5c   :  { %583 = vmatprep.subr.bf16.mxu1 %v753_v0  ;;  %v390_v23 = vld [vmem:[%s911_s6] ss:$0 sm:$0xff]  ;;  %p718_p4 = scmp.ne.s32.totalorder %s378_s29, %s717_s4  ;;  %p723_p6 = scmp.lt.s32.totalorder %s717_s4, %s717_s4 }
  0x5d   :  { %561 = vmatpush3.bf16.msra.mxu0 %v560_v27  ;;  %vm364_vm1 = vcmp.ge.s32.totalorder %v363_v22, 4  ;;  %vm365_vm2 = vcmp.lt.s32.totalorder %v363_v22, 8 }
  0x5e   :  { %562 = vmatprep.subr.bf16.mxu0 %v753_v0  ;;  %vm366_vm3 = vmand %vm364_vm1, %vm365_vm2  ;;  %p724_p7 = por %p723_p6, %p722_p5 }
  0x5f   :  { %585 = vmatpush3.bf16.msra.mxu1 %v584_v36 }
  0x60   :  { %586 = vmatprep.subr.bf16.mxu1 %v753_v0  ;;  %p725_p8 = pnand %p724_p7, %p718_p4 }
  0x61   :  { %564 = vmatpush3.bf16.msra.mxu0 %v563_v33 }
  0x62   :  { %565 = vmatprep.subr.bf16.mxu0 %v753_v0 }
  0x63   :  { %588 = vmatpush3.bf16.msra.mxu1 %v587_v42 }
  0x64   :  { %589 = vmatprep.subr.bf16.mxu1 %v753_v0 }
  0x65   :  { %567 = vmatpush3.bf16.msra.mxu0 %v566_v39 }
  0x66   :  { %568 = vmatprep.subr.bf16.mxu0 %v753_v0 }
  0x67   :  { %591 = vmatpush3.bf16.msra.mxu1 %v590_v46 }
  0x68   :  { %592 = vmatprep.subr.bf16.mxu1 %v753_v0 }
  0x69   :  { %570 = vmatpush3.bf16.msra.mxu0 %v569_v45 }
  0x6a   :  { %595 = vmatprep.subr.bf16.mxu0 %v753_v0 }
  0x6b   :  { %594 = vmatpush3.bf16.msra.mxu1 %v593_v50 }
  0x6c   :  { %475 = vmatmul.mubr.f32.vlgmr.msra.gmra.mrb[0].mxu0 %v80_v47 }
  0x6d   :  { %544 = vmatprep.mubr.msk.f32.mxu0 %vm754_vm0, %v755_v1  ;;  %597 = vmatpush3.bf16.msra.mxu0 %v596_v54  ;;  %v278_v1 = vld [vmem:[#allocation8 + $0x48] sm:$0xff] }
  0x6e   :  { %598 = vmatprep.subr.bf16.mxu0 %v753_v0  ;;  %v608_v2 = vpack.c.bf16 %v278_v1, %v277_v63 }
  0x71   :  { %600 = vmatpush3.bf16.msra.mxu0 %v599_v56 }
  0x72   :  { %601 = vmatprep.subr.bf16.mxu0 %v753_v0 }
  0x75   :  { %603 = vmatpush3.bf16.msra.mxu0 %v602_v59 }
  0x76   :  { %604 = vmatprep.subr.bf16.mxu0 %v753_v0 }
  0x79   :  { %606 = vmatpush3.bf16.msra.mxu0 %v605_v62 }
  0x7a   :  { %607 = vmatprep.subr.bf16.mxu0 %v753_v0 }
  0x7d   :  { %609 = vmatpush3.bf16.msra.mxu0 %v608_v2 }
  0x7e   :  { %610 = vmatprep.subr.bf16.mxu0 %v753_v0 }
  0x81   :  { %612 = vmatpush3.bf16.msra.mxu0 %v611_v5 }
  0x82   :  { %613 = vmatprep.subr.bf16.mxu0 %v753_v0 }
  0x85   :  { %615 = vmatpush3.bf16.msra.mxu0 %v614_v8 }
  0x86   :  { %616 = vmatprep.subr.bf16.mxu0 %v753_v0 }
  0x89   :  { %618 = vmatpush3.bf16.msra.mxu0 %v617_v16 }
 0x13f   :  { %v170_v10 = vpop.f32.mrb[0].mxu0 }
 0x140   :  { %v171_v11 = vadd.f32 %v388_v9, %v170_v10  ;;  %v476_v12 = vpop.f32.mrb[1].mxu0 }
 0x142   :  { %v174_v13 = vmax.f32 %v171_v11, 0.0 }
 0x144   :  { %510 = vmatmul.mubr.f32.vlgmr.msra.gmra.mrb[0].mxu1 %v174_v13 }
 0x217   :  { %v264_v18 = vpop.f32.mrb[0].mxu1 }
 0x218   :  { %v265_v19 = vadd.f32 %v389_v17, %v264_v18  ;;  %v511_v0 = vpop.f32.mrb[1].mxu1 }
 0x21a   :  { %v268_v20 = vmax.f32 %v265_v19, 0.0 }
 0x21c   :  { %545 = vmatmul.mubr.f32.vlgmr.msra.gmra.mrb[2].mxu0 %v268_v20 }
 0x2ef   :  { %v358_v24 = vpop.f32.mrb[2].mxu0 }
 0x2f0   :  { %v359_v25 = vadd.f32 %v390_v23, %v358_v24  ;;  %v546_v26 = vpop.f32.mrb[3].mxu0 }
 0x2f2   :  { %v367_v27 = vmax.f32 %v359_v25, -20.0 }
 0x2f4   :  { %v368_v28 = vmin.f32 %v367_v27, 2.0 }
 0x2f6   :  { %v369_v29 = vsel %vm366_vm3, %v368_v28, %v359_v25 }
 0x2f7   :  { %370 = vst [vmem:[#allocation10] sm:$0xff] %v369_v29 }
 0x2f8   :  { %728 = shalt.err (!%p725_p8)
}
 0x2f9   :  { %s729_s8 = scalar_lea.hbm %s912_s7, 128 }
 0x2fa   :  { %p730_p9 = scmp.ne.s32.totalorder %s912_s7, %s729_s8  ;;  %p733_p10 = scmp.lt.u32.totalorder %s729_s8, %s912_s7 }
 0x2fc   :  { %p735_p11 = pnand %p733_p10, %p730_p9 }
 0x2fe   :  { %738 = shalt.err (!%p735_p11)
}
 0x2ff   :  { %380 = dma.vmem_to_hbm [thread:$0]  %s378_s29, 128, %s912_s7, [#allocation4]  }
 0x300   :  { %745 = dma.done.wait [#allocation4], 128  }
 0x301   :  { %746 = vsyncadd [#allocation4], 4294967168 }
 0x302   :  { %384 = vsyncpa [#allocation3], 1 }
 0x303   :  { %385 = vsyncpa [#allocation6], 1 }
 0x304   :  { %386 = vsyncpa [#allocation9], 1 }
 0x305   :  { %387 = vsyncpa [#allocation4], 1 }

</bundles_post_ra>
